<compile_context>
chip_gen: v6e
topology: v6e:2x2x1
jax: 0.10.0
libtpu: 0.0.40
codegen_flags: <defaults>
</compile_context>

<pallas_src>
import functools

import jax
import jax.numpy as jnp
import numpy as np
from jax.experimental import pallas as pl
from jax.experimental.pallas import tpu as pltpu


def _round8(n):
    return ((n + 7) // 8) * 8


# -----------------------------------------------------------------------------
# Parameter packing: one lane-padded (rows, 128) f32 slab holding every weight.
# Each sub-block starts on an 8-row boundary so static slices stay tile-aligned.
# -----------------------------------------------------------------------------
def _pack_slab(params, *, A, S, pe_row):
    f32 = jnp.float32
    M, Hm = params["wm1"].shape
    Dm = params["wm2"].shape[1]
    FF = params["wff1"].shape[1]
    H0 = params["wd0"].shape[1]
    AS = A * S
    assert max(M, Hm, Dm, FF, H0, A, S, 16) <= 128, "packing assumes widths <= 128"

    blocks, off = [], {}
    row = 0

    def add(name, arr):
        nonlocal row
        arr = jnp.asarray(arr, f32)
        r = _round8(arr.shape[0])
        blk = jnp.zeros((r, 128), f32).at[: arr.shape[0], : arr.shape[1]].set(arr)
        off[name] = row
        blocks.append(blk)
        row += r

    add("wm1", params["wm1"])            # (M, Hm)   meta-encoder layer 1
    add("wm2", params["wm2"])            # (Hm, Dm)  meta-encoder layer 2
    add("wd0_lc", params["wd0"][:AS])    # (A*S, H0) decoder layer-0, LC part
    add("wd0_m", params["wd0"][AS:])     # (Dm, H0)  decoder layer-0, meta part
    add("wd1", params["wd1"])            # (H0, A)   decoder layer-1 (lanes A..127 zero)

    # one 16-row block with all row vectors + the 13 transformer scalars
    vec = jnp.zeros((16, 128), f32)
    vec = vec.at[0, :Hm].set(params["bm1"][0])
    vec = vec.at[1, :Dm].set(params["bm2"][0])
    vec = vec.at[2, :FF].set(params["wff1"][0])
    vec = vec.at[3, :FF].set(params["bff1"][0])
    vec = vec.at[4, :FF].set(params["wff2"][0])
    vec = vec.at[5, :H0].set(params["bd0"][0])
    vec = vec.at[6, :A].set(params["bd1"][0])   # lanes A..127 stay zero (lane-dense out)
    vec = vec.at[7, :S].set(pe_row)
    nsc = params["scalars"].shape[0]
    vec = vec.at[8, :nsc].set(params["scalars"])
    off["vec"] = row
    blocks.append(vec)
    row += 16

    slab = jnp.concatenate(blocks, axis=0)
    dims = dict(A=A, S=S, M=M, Hm=Hm, Dm=Dm, FF=FF, H0=H0)
    return slab, off, dims


# -----------------------------------------------------------------------------
# Folded kernel (default): one grid step == TB datasets.
# With d_model == 1, LayerNorm returns exactly its bias, so lc_encoding is the
# constant ln2_bias; the LC contribution to decoder layer 0 collapses to
# ln2_bias * column_sum(wd0_lc).  Only the meta features and weights are read.
# -----------------------------------------------------------------------------
def _masif_fwd_folded_kernel(meta_ref, slab_ref, out_ref, *, dims, off):
    f32 = jnp.float32
    A, S, M = dims["A"], dims["S"], dims["M"]
    Hm, Dm, H0 = dims["Hm"], dims["Dm"], dims["H0"]
    AS = A * S

    wm1 = slab_ref[off["wm1"]:off["wm1"] + M, :Hm]            # (M, Hm)
    wm2 = slab_ref[off["wm2"]:off["wm2"] + Hm, :Dm]           # (Hm, Dm)
    wd0_lc = slab_ref[off["wd0_lc"]:off["wd0_lc"] + AS, :H0]  # (A*S, H0)
    wd0_m = slab_ref[off["wd0_m"]:off["wd0_m"] + Dm, :H0]     # (Dm, H0)
    wd1_full = slab_ref[off["wd1"]:off["wd1"] + H0, :]        # (H0, 128) zero-padded
    v0 = off["vec"]
    bm1 = slab_ref[v0 + 0:v0 + 1, :Hm]
    bm2 = slab_ref[v0 + 1:v0 + 2, :Dm]
    bd0 = slab_ref[v0 + 5:v0 + 6, :H0]
    bd1_full = slab_ref[v0 + 6:v0 + 7, :]                     # (1, 128) zero-padded
    sc = slab_ref[v0 + 8:v0 + 9, :16]
    ln2b = sc[:, 11:12]                                       # (1, 1)

    # dataset meta-feature encoder MLP: (TB, M) -> (TB, Dm)
    meta = meta_ref[...]
    hm = jnp.maximum(jnp.dot(meta, wm1, preferred_element_type=f32) + bm1, 0.0)
    d_enc = jnp.dot(hm, wm2, preferred_element_type=f32) + bm2

    # degenerate d_model == 1 LayerNorm: every token of lc_encoding == ln2_bias
    #   flatten(lc_enc) @ wd0_lc == ln2_bias * column_sum(wd0_lc)
    z_lc = ln2b * jnp.sum(wd0_lc, axis=0, keepdims=True)      # (1, H0)

    # decoder MLP on cat([flatten(lc_enc), d_enc])
    z = jnp.maximum(
        z_lc + jnp.dot(d_enc, wd0_m, preferred_element_type=f32) + bd0, 0.0)
    # lane-dense store: wd1 / bd1 are zero beyond column A, so cols A..127 are 0.
    out_ref[...] = jnp.dot(z, wd1_full, preferred_element_type=f32) + bd1_full


# -----------------------------------------------------------------------------
# Full transformer kernel (verification of the fold): one grid step == 1 dataset.
# -----------------------------------------------------------------------------
def _masif_fwd_full_kernel(lc_ref, mask_ref, meta_ref, slab_ref, out_ref, *,
                           dims, off):
    f32 = jnp.float32
    A, S, M = dims["A"], dims["S"], dims["M"]
    Hm, Dm, FF, H0 = dims["Hm"], dims["Dm"], dims["FF"], dims["H0"]
    AS = A * S

    wm1 = slab_ref[off["wm1"]:off["wm1"] + M, :Hm]
    wm2 = slab_ref[off["wm2"]:off["wm2"] + Hm, :Dm]
    wd0_lc = slab_ref[off["wd0_lc"]:off["wd0_lc"] + AS, :H0]
    wd0_m = slab_ref[off["wd0_m"]:off["wd0_m"] + Dm, :H0]
    wd1 = slab_ref[off["wd1"]:off["wd1"] + H0, :A]
    v0 = off["vec"]
    bm1 = slab_ref[v0 + 0:v0 + 1, :Hm]
    bm2 = slab_ref[v0 + 1:v0 + 2, :Dm]
    bd0 = slab_ref[v0 + 5:v0 + 6, :H0]
    bd1 = slab_ref[v0 + 6:v0 + 7, :A]
    sc = slab_ref[v0 + 8:v0 + 9, :16]
    ln2b = sc[:, 11:12]

    # dataset meta-feature encoder MLP: (1, M) -> (1, Dm)
    meta = meta_ref[0]
    hm = jnp.maximum(jnp.dot(meta, wm1, preferred_element_type=f32) + bm1, 0.0)
    d_enc = jnp.dot(hm, wm2, preferred_element_type=f32) + bm2

    wq, bq = sc[:, 0:1], sc[:, 1:2]
    wk, bk = sc[:, 2:3], sc[:, 3:4]
    wv, bv = sc[:, 4:5], sc[:, 5:6]
    wo, bo = sc[:, 6:7], sc[:, 7:8]
    ln1g, ln1b = sc[:, 8:9], sc[:, 9:10]
    ln2g = sc[:, 10:11]
    bff2 = sc[:, 12:13]
    wff1 = slab_ref[v0 + 2:v0 + 3, :FF]
    bff1 = slab_ref[v0 + 3:v0 + 4, :FF]
    wff2 = slab_ref[v0 + 4:v0 + 5, :FF]
    pe = slab_ref[v0 + 7:v0 + 8, :S]
    eps = f32(1e-5)

    x = lc_ref[0] + pe                                        # (A, S)
    valid = mask_ref[0] > 0.5                                 # True = attendable key

    # single-head self-attention over fidelities, per algorithm (d_model = 1)
    q = x * wq + bq
    k = x * wk + bk
    vv = x * wv + bv
    s3 = q[:, :, None] * k[:, None, :]                        # (A, S, S)
    s3 = jnp.where(valid[:, None, :], s3, f32(-1e30))         # key padding mask
    s3 = s3 - jnp.max(s3, axis=-1, keepdims=True)
    p = jnp.exp(s3)
    p = p * pl.reciprocal(jnp.sum(p, axis=-1, keepdims=True), approx=True)
    attn = jnp.sum(p * vv[:, None, :], axis=-1) * wo + bo

    # residual + LayerNorm over the size-1 feature dim
    x1 = x + attn
    d1 = x1 - x1
    y1 = d1 * jax.lax.rsqrt(d1 * d1 + eps) * ln1g + ln1b

    # feed-forward 1 -> FF -> 1 with ReLU
    h = jnp.maximum(y1[:, :, None] * wff1[None, :, :] + bff1[None, :, :], 0.0)
    ffn = jnp.sum(h * wff2[None, :, :], axis=-1) + bff2
    x2 = y1 + ffn
    d2 = x2 - x2
    lc_enc = d2 * jax.lax.rsqrt(d2 * d2 + eps) * ln2g + ln2b  # (A, S)

    # decoder layer-0 LC contribution as one fused contraction:
    #   z_lc[h] = sum_{a,s} lc_enc[a, s] * wd0_lc[a*S + s, h]
    wd0_lc3 = wd0_lc.reshape(A, S, H0)
    t = jnp.sum(lc_enc[:, :, None] * wd0_lc3, axis=1)         # (A, H0)
    z_lc = jnp.sum(t, axis=0, keepdims=True)                  # (1, H0)

    z = jnp.maximum(
        z_lc + jnp.dot(d_enc, wd0_m, preferred_element_type=f32) + bd0, 0.0)
    out_ref[0] = jnp.dot(z, wd1, preferred_element_type=f32) + bd1


# -----------------------------------------------------------------------------
# Wrapper
# -----------------------------------------------------------------------------
def _prep_tokens(learning_curves, mask):
    """convert_lc glue: prepend zero token / ones mask, build the PE row."""
    B, A, F = learning_curves.shape
    S = F + 1
    lc_pad = jnp.concatenate(
        [jnp.zeros((B, A, 1), jnp.float32), learning_curves.astype(jnp.float32)],
        axis=-1)
    mask_pad = jnp.concatenate(
        [jnp.ones((B, A, 1), jnp.float32), mask.astype(jnp.float32)], axis=-1)
    pos = jnp.arange(S, dtype=jnp.float32)
    pe_row = jnp.where(pos >= 1.0, jnp.sin(pos - 1.0), 0.0)   # (S,)
    return lc_pad, mask_pad, pe_row


def masif_forward_pallas(params, learning_curves, mask, dataset_meta_features,
                         *, fold_degenerate_layernorm=True):
    B, A, F = learning_curves.shape
    S = F + 1
    lc_pad, mask_pad, pe_row = _prep_tokens(learning_curves, mask)
    slab, off, dims = _pack_slab(params, A=A, S=S, pe_row=pe_row)
    R = slab.shape[0]
    meta2 = dataset_meta_features.astype(jnp.float32).reshape(B, -1)
    M = meta2.shape[-1]

    if fold_degenerate_layernorm:
        # Batched, folded path: TB datasets per grid step, lane-dense output.
        TB = min(128, _round8(B))
        B_pad = ((B + TB - 1) // TB) * TB
        if B_pad != B:
            meta2 = jnp.concatenate(
                [meta2, jnp.zeros((B_pad - B, M), jnp.float32)], axis=0)
        kernel = functools.partial(_masif_fwd_folded_kernel, dims=dims, off=off)
        out = pl.pallas_call(
            kernel,
            out_shape=jax.ShapeDtypeStruct((B_pad, 128), jnp.float32),
            grid=(B_pad // TB,),
            in_specs=[
                pl.BlockSpec((TB, M), lambda b: (b, 0)),      # meta features
                pl.BlockSpec((R, 128), lambda b: (0, 0)),     # weights (VMEM-resident)
            ],
            out_specs=pl.BlockSpec((TB, 128), lambda b: (b, 0)),
            compiler_params=pltpu.CompilerParams(
                dimension_semantics=("parallel",)),
        )(meta2, slab)
        return out[:B, :A]

    # Full transformer path (verification of the fold): one dataset per step.
    meta3 = meta2.reshape(B, 1, M)
    kernel = functools.partial(_masif_fwd_full_kernel, dims=dims, off=off)
    out = pl.pallas_call(
        kernel,
        out_shape=jax.ShapeDtypeStruct((B, 1, A), jnp.float32),
        grid=(B,),
        in_specs=[
            pl.BlockSpec((1, A, S), lambda b: (b, 0, 0)),     # learning curves
            pl.BlockSpec((1, A, S), lambda b: (b, 0, 0)),     # key-padding mask
            pl.BlockSpec((1, 1, M), lambda b: (b, 0, 0)),     # dataset meta features
            pl.BlockSpec((R, 128), lambda b: (0, 0)),         # weights (VMEM-resident)
        ],
        out_specs=pl.BlockSpec((1, 1, A), lambda b: (b, 0, 0)),
        compiler_params=pltpu.CompilerParams(
            dimension_semantics=("parallel",)),
    )(lc_pad, mask_pad, meta3, slab)
    return out.reshape(B, A)


# -----------------------------------------------------------------------------
# Synthetic parameters + pure-JAX reference
# -----------------------------------------------------------------------------
def make_params(key, *, A, F, M, Hm, Dm, FF, H0):
    """Deterministic synthetic parameters (shapes match the module __init__)."""
    S = F + 1
    D_in = Dm + A * S
    keys = jax.random.split(key, 8)

    def lin(k, fan_in, fan_out):
        return 0.1 * jax.random.normal(k, (fan_in, fan_out), jnp.float32)

    params = dict(
        wm1=lin(keys[0], M, Hm),   bm1=0.01 * jnp.ones((1, Hm), jnp.float32),
        wm2=lin(keys[1], Hm, Dm),  bm2=0.01 * jnp.ones((1, Dm), jnp.float32),
        wff1=lin(keys[2], 1, FF),  bff1=0.01 * jnp.ones((1, FF), jnp.float32),
        wff2=lin(keys[3], 1, FF),  # linear2 weight (FF -> 1) stored as a row
        wd0=lin(keys[4], D_in, H0), bd0=0.01 * jnp.ones((1, H0), jnp.float32),
        wd1=lin(keys[5], H0, A),    bd1=0.01 * jnp.ones((1, A), jnp.float32),
    )
    # [wq, bq, wk, bk, wv, bv, wo, bo, ln1_g, ln1_b, ln2_g, ln2_b, b_ffn2]
    params["scalars"] = 0.5 * jax.random.normal(keys[6], (13,), jnp.float32)
    return params


def ref_forward(params, learning_curves, mask, dataset_meta_features):
    """Pure-JAX reference mirroring the PyTorch forward semantics (full path)."""
    B, A, F = learning_curves.shape
    S = F + 1
    lc_pad, mask_pad, pe_row = _prep_tokens(learning_curves, mask)
    x = lc_pad + pe_row[None, None, :]
    sc = params["scalars"]
    q = x * sc[0] + sc[1]
    k = x * sc[2] + sc[3]
    v = x * sc[4] + sc[5]
    scores = q[..., :, None] * k[..., None, :]
    scores = jnp.where(mask_pad[..., None, :] > 0.5, scores, -1e30)
    p = jax.nn.softmax(scores, axis=-1)
    attn = jnp.sum(p * v[..., None, :], axis=-1) * sc[6] + sc[7]
    eps = 1e-5
    x1 = x + attn
    d1 = x1 - x1
    y1 = d1 * jax.lax.rsqrt(d1 * d1 + eps) * sc[8] + sc[9]
    h = jnp.maximum(y1[..., None] * params["wff1"][0] + params["bff1"][0], 0.0)
    ffn = jnp.sum(h * params["wff2"][0], axis=-1) + sc[12]
    x2 = y1 + ffn
    d2 = x2 - x2
    lc_enc = d2 * jax.lax.rsqrt(d2 * d2 + eps) * sc[10] + sc[11]          # (B, A, S)
    meta = dataset_meta_features.astype(jnp.float32)
    hm = jnp.maximum(meta @ params["wm1"] + params["bm1"], 0.0)
    d_enc = hm @ params["wm2"] + params["bm2"]                            # (B, Dm)
    dec_in = jnp.concatenate([lc_enc.reshape(B, A * S), d_enc], axis=1)
    z = jnp.maximum(dec_in @ params["wd0"] + params["bd0"], 0.0)
    return z @ params["wd1"] + params["bd1"]                              # (B, A)


if __name__ == "__main__":
    # small shapes consistent with the module's forward
    B, A, F, M = 4, 8, 7, 16       # n_datasets (batched as independent calls), n_algos, n_fidelities, n_meta_features
    Hm, Dm = 32, 16                # metaf-encoder hidden / output dim
    FF, H0 = 32, 32                # transformer dim_feedforward, decoder hidden dim

    key = jax.random.PRNGKey(0)
    k_lc, k_meta, k_par = jax.random.split(key, 3)
    learning_curves = jax.random.uniform(k_lc, (B, A, F), jnp.float32)
    lengths = (jnp.arange(A)[None, :] + jnp.arange(B)[:, None]) % F + 1
    mask = (jnp.arange(F)[None, None, :] < lengths[:, :, None]).astype(jnp.float32)
    dataset_meta_features = jax.random.normal(k_meta, (B, M), jnp.float32)

    params = make_params(k_par, A=A, F=F, M=M, Hm=Hm, Dm=Dm, FF=FF, H0=H0)
    ref = ref_forward(params, learning_curves, mask, dataset_meta_features)

    # default (optimized) path: degenerate d_model==1 LayerNorm folded,
    # batched datasets per grid step, lane-dense output
    out_fast = masif_forward_pallas(params, learning_curves, mask,
                                    dataset_meta_features,
                                    fold_degenerate_layernorm=True)
    jax.block_until_ready(out_fast)
    assert out_fast.shape == (B, A)
    np.testing.assert_allclose(np.asarray(out_fast), np.asarray(ref),
                               rtol=1e-3, atol=1e-3)

    # full transformer path (verification of the fold)
    out_full = masif_forward_pallas(params, learning_curves, mask,
                                    dataset_meta_features,
                                    fold_degenerate_layernorm=False)
    jax.block_until_ready(out_full)
    np.testing.assert_allclose(np.asarray(out_full), np.asarray(ref),
                               rtol=1e-3, atol=1e-3)

    print("KERNEL_OK")
</pallas_src>

<mosaic_0001>
module attributes {stable_mosaic.version = 11 : i64} {
  func.func @_masif_fwd_folded_kernel(%arg0: i32, %arg1: memref<8x16xf32, #tpu.memory_space<vmem>>, %arg2: memref<176x128xf32, #tpu.memory_space<vmem>>, %arg3: memref<8x128xf32, #tpu.memory_space<vmem>>) attributes {dimension_semantics = [#tpu.dimension_semantics<parallel>], iteration_bounds = array<i64: 1>, scalar_prefetch = 0 : i64, scratch_operands = 0 : i64, tpu.core_type = #tpu.core_type<tc>, window_params = [{transform_indices = @transform_0, window_bounds = array<i64: 8, 16>}, {pipeline_mode = #tpu.pipeline_mode<synchronous>, transform_indices = @transform_1, window_bounds = array<i64: 176, 128>}, {transform_indices = @transform_2, window_bounds = array<i64: 8, 128>}]} {
    %c0 = arith.constant 0 : index
    %c0_0 = arith.constant 0 : index
    %0 = vector.load %arg2[%c0, %c0_0] : memref<176x128xf32, #tpu.memory_space<vmem>>, vector<16x32xf32>
    %c16 = arith.constant 16 : index
    %c0_1 = arith.constant 0 : index
    %1 = vector.load %arg2[%c16, %c0_1] : memref<176x128xf32, #tpu.memory_space<vmem>>, vector<32x16xf32>
    %c48 = arith.constant 48 : index
    %c0_2 = arith.constant 0 : index
    %2 = vector.load %arg2[%c48, %c0_2] : memref<176x128xf32, #tpu.memory_space<vmem>>, vector<64x32xf32>
    %c112 = arith.constant 112 : index
    %c0_3 = arith.constant 0 : index
    %3 = vector.load %arg2[%c112, %c0_3] : memref<176x128xf32, #tpu.memory_space<vmem>>, vector<16x32xf32>
    %c128 = arith.constant 128 : index
    %c0_4 = arith.constant 0 : index
    %4 = vector.load %arg2[%c128, %c0_4] : memref<176x128xf32, #tpu.memory_space<vmem>>, vector<32x128xf32>
    %c160 = arith.constant 160 : index
    %c0_5 = arith.constant 0 : index
    %5 = vector.load %arg2[%c160, %c0_5] : memref<176x128xf32, #tpu.memory_space<vmem>>, vector<1x32xf32>
    %c161 = arith.constant 161 : index
    %c0_6 = arith.constant 0 : index
    %6 = vector.load %arg2[%c161, %c0_6] : memref<176x128xf32, #tpu.memory_space<vmem>>, vector<1x16xf32>
    %c165 = arith.constant 165 : index
    %c0_7 = arith.constant 0 : index
    %7 = vector.load %arg2[%c165, %c0_7] : memref<176x128xf32, #tpu.memory_space<vmem>>, vector<1x32xf32>
    %c166 = arith.constant 166 : index
    %c0_8 = arith.constant 0 : index
    %8 = vector.load %arg2[%c166, %c0_8] : memref<176x128xf32, #tpu.memory_space<vmem>>, vector<1x128xf32>
    %c168 = arith.constant 168 : index
    %c0_9 = arith.constant 0 : index
    %9 = vector.load %arg2[%c168, %c0_9] : memref<176x128xf32, #tpu.memory_space<vmem>>, vector<1x16xf32>
    %10 = vector.extract_strided_slice %9 {offsets = [0, 11], sizes = [1, 1], strides = [1, 1]} : vector<1x16xf32> to vector<1x1xf32>
    %c0_10 = arith.constant 0 : index
    %c0_11 = arith.constant 0 : index
    %11 = vector.load %arg1[%c0_10, %c0_11] : memref<8x16xf32, #tpu.memory_space<vmem>>, vector<8x16xf32>
    %cst = arith.constant dense<0.000000e+00> : vector<8x32xf32>
    %12 = tpu.matmul %11, %0, %cst {dimension_numbers = #tpu.dot_dimension_numbers<[1], [0], [0], [1], [0, 0, 1, 1], [], []>} : vector<8x16xf32>, vector<16x32xf32>, vector<8x32xf32> -> vector<8x32xf32>
    %13 = vector.broadcast %5 : vector<1x32xf32> to vector<8x32xf32>
    %14 = arith.addf %12, %13 : vector<8x32xf32>
    %cst_12 = arith.constant 0.000000e+00 : f32
    %15 = vector.broadcast %cst_12 : f32 to vector<8x32xf32>
    %16 = arith.maximumf %14, %15 : vector<8x32xf32>
    %cst_13 = arith.constant dense<0.000000e+00> : vector<8x16xf32>
    %17 = tpu.matmul %16, %1, %cst_13 {dimension_numbers = #tpu.dot_dimension_numbers<[1], [0], [0], [1], [0, 0, 1, 1], [], []>} : vector<8x32xf32>, vector<32x16xf32>, vector<8x16xf32> -> vector<8x16xf32>
    %18 = vector.broadcast %6 : vector<1x16xf32> to vector<8x16xf32>
    %19 = arith.addf %17, %18 : vector<8x16xf32>
    %cst_14 = arith.constant dense<0.000000e+00> : vector<32xf32>
    %20 = vector.multi_reduction <add>, %2, %cst_14 [0] : vector<64x32xf32> to vector<32xf32>
    %21 = vector.shape_cast %20 : vector<32xf32> to vector<1x32xf32>
    %22 = vector.broadcast %10 : vector<1x1xf32> to vector<1x32xf32>
    %23 = arith.mulf %22, %21 : vector<1x32xf32>
    %cst_15 = arith.constant dense<0.000000e+00> : vector<8x32xf32>
    %24 = tpu.matmul %19, %3, %cst_15 {dimension_numbers = #tpu.dot_dimension_numbers<[1], [0], [0], [1], [0, 0, 1, 1], [], []>} : vector<8x16xf32>, vector<16x32xf32>, vector<8x32xf32> -> vector<8x32xf32>
    %25 = vector.broadcast %23 : vector<1x32xf32> to vector<8x32xf32>
    %26 = arith.addf %25, %24 : vector<8x32xf32>
    %27 = vector.broadcast %7 : vector<1x32xf32> to vector<8x32xf32>
    %28 = arith.addf %26, %27 : vector<8x32xf32>
    %cst_16 = arith.constant 0.000000e+00 : f32
    %29 = vector.broadcast %cst_16 : f32 to vector<8x32xf32>
    %30 = arith.maximumf %28, %29 : vector<8x32xf32>
    %cst_17 = arith.constant dense<0.000000e+00> : vector<8x128xf32>
    %31 = tpu.matmul %30, %4, %cst_17 {dimension_numbers = #tpu.dot_dimension_numbers<[1], [0], [0], [1], [0, 0, 1, 1], [], []>} : vector<8x32xf32>, vector<32x128xf32>, vector<8x128xf32> -> vector<8x128xf32>
    %32 = vector.broadcast %8 : vector<1x128xf32> to vector<8x128xf32>
    %33 = arith.addf %31, %32 : vector<8x128xf32>
    %c0_18 = arith.constant 0 : index
    %c0_19 = arith.constant 0 : index
    %34 = vector.load %arg3[%c0_18, %c0_19] : memref<8x128xf32, #tpu.memory_space<vmem>>, vector<8x128xf32>
    tpu.vector_store %arg3[%c0_18, %c0_19], %33 {strides = array<i32>} : memref<8x128xf32, #tpu.memory_space<vmem>>, vector<8x128xf32>,
    return
  }
  func.func @transform_0(%arg0: i32) -> (i32, i32) {
    %c0_i32 = arith.constant 0 : i32
    %c0_i32_0 = arith.constant 0 : i32
    return %arg0, %c0_i32 : i32, i32
  }
  func.func @transform_1(%arg0: i32) -> (i32, i32) {
    %c0_i32 = arith.constant 0 : i32
    %c0_i32_0 = arith.constant 0 : i32
    %c0_i32_1 = arith.constant 0 : i32
    return %c0_i32, %c0_i32_0 : i32, i32
  }
  func.func @transform_2(%arg0: i32) -> (i32, i32) {
    %c0_i32 = arith.constant 0 : i32
    %c0_i32_0 = arith.constant 0 : i32
    return %arg0, %c0_i32 : i32, i32
  }
}

</mosaic_0001>

<bundles_post_ra>
// kernel: tpu_custom_call.1
= control target key start
LH: loop header
LB: loop body
LE: loop exit
PB: predicated region body
PF: predicated region fallthrough
CT: control target
= control target key end

     0   :  { %7 = vsyncpa [#allocation3], 0  ;;  %s609_s0 = inlined_call_operand.hbm [shape: f32[8,16], index: 0, kind: input, shape index: {}]   ;;  %s610_s1 = inlined_call_operand.hbm [shape: f32[176,128], index: 1, kind: input, shape index: {}]   ;;  %s611_s2 = inlined_call_operand.hbm [shape: f32[8,128], index: 2, kind: output, shape index: {}]  }
   0x1   :  { %8 = vsyncpa [#allocation6], 0 }
   0x2   :  { %9 = vsyncpa [#allocation4], 0  ;;  %s561_s9 = smov [#allocation2]   ;;  %s562_s11 = smov [#allocation5]  }
   0x3   :  { %s16_s10 = sshll.u32 %s561_s9, 4  ;;  %s25_s12 = sshll.u32 %s562_s11, 4  ;;  %s17_s10 = int_to_ptr.vmem [resolvable:$true] %s16_s10  ;;  %s26_s12 = int_to_ptr.vmem [resolvable:$true] %s25_s12 }
   0x4   :  { %s503_s13 = scalar_lea.vmem %s17_s10, 128  ;;  %p508_p1 = scmp.lt.s32.totalorder %s17_s10, %s17_s10 }
   0x5   :  { %p504_p0 = scmp.ne.s32.totalorder %s17_s10, %s503_s13  ;;  %p509_p2 = scmp.lt.s32.totalorder %s503_s13, %s503_s13 }
   0x7   :  { %p510_p3 = por %p509_p2, %p508_p1 }
   0x9   :  { %p511_p4 = pnand %p510_p3, %p504_p0 }
   0xb   :  { %514 = shalt.err (!%p511_p4)
}
   0xc   :  { %19 = dma.hbm_to_vmem [thread:$0]  %s609_s0, 128, %s17_s10, [#allocation3]  }
   0xd   :  { %s523_s16 = scalar_lea.vmem %s26_s12, 2816  ;;  %p528_p6 = scmp.lt.s32.totalorder %s26_s12, %s26_s12 }
   0xe   :  { %p524_p5 = scmp.ne.s32.totalorder %s26_s12, %s523_s16  ;;  %p529_p7 = scmp.lt.s32.totalorder %s523_s16, %s523_s16 }
  0x10   :  { %p530_p8 = por %p529_p7, %p528_p6 }
  0x12   :  { %p531_p9 = pnand %p530_p8, %p524_p5 }
  0x14   :  { %534 = shalt.err (!%p531_p9)
}
  0x15   :  { %s563_s17 = smov 128   ;;  %s564_s18 = smov 8  }
  0x16   :  { %31 = dma.hbm_to_vmem [thread:$0]  %s610_s1, 2816, %s26_s12, [#allocation6], %s563_s17, %s563_s17, %s564_s18  }
  0x17   :  { %555 = dma.done.wait [#allocation3], 128  }
  0x18   :  { %556 = vsyncadd [#allocation3], 4294967168 }
  0x19   :  { %557 = dma.done.wait [#allocation6], 2816  }
  0x1a   :  { %558 = vsyncadd [#allocation6], 4294964480  ;;  %v565_v0 = vmov 0.0   ;;  %vm566_vm0 = vmmov 0   ;;  %v39_v1 = vld [vmem:[#allocation5 + $0x8] sm:$0xff]  ;;  %v38_v2 = vld [vmem:[#allocation5] sm:$0xff]  ;;  %v321_v53 = vlaneseq }
  0x1b   :  { %450 = vmatprep.subr.mxu1 %v565_v0  ;;  %454 = vmatprep.mubr.msk.f32.mxu1 %vm566_vm0, %v565_v0  ;;  %v63_v3 = vld [vmem:[#allocation2] sm:$0xff]  ;;  %vm68_vm1 = vcmask 130048   ;;  %v43_v4 = vld [vmem:[#allocation5 + $0x28] sm:$0xff]  ;;  %v42_v5 = vld [vmem:[#allocation5 + $0x20] sm:$0xff]  ;;  %vm147_vm2 = vcmask 261120   ;;  %v567_v16 = vmov 11  }
  0x1c   :  { %468 = vmatprep.subr.mxu0 %v565_v0  ;;  %472 = vmatprep.mubr.msk.f32.mxu0 %vm566_vm0, %v565_v0  ;;  %v41_v6 = vld [vmem:[#allocation5 + $0x18] sm:$0xff]  ;;  %v40_v7 = vld [vmem:[#allocation5 + $0x10] sm:$0xff]  ;;  %v426_v8 = vld [vmem:[#allocation5 + $0xa0] ss:$0 sm:$0xff]  ;;  %v322_v55 = vshrl.u32 %v321_v53, 7  ;;  %s568_s0 = smov [#allocation7]  }
  0x1d   :  { %451 = vmatpush3.msra.mxu1 %v39_v1  ;;  %v53_v13 = vld [vmem:[#allocation5 + $0x78] sm:$0xff]  ;;  %v52_v14 = vld [vmem:[#allocation5 + $0x70] sm:$0xff]  ;;  %v62_v15 = vld [vmem:[#allocation5 + $0xa8] sm:$0x1]  ;;  %494 = vset.pattern.permute.xlu0 %v567_v16  ;;  %s416_s1 = sshll.u32 %s568_s0, 4  ;;  %s417_s1 = int_to_ptr.vmem [resolvable:$true] %s416_s1 }
  0x1e   :  { %452 = vmatprep.subr.mxu1 %v565_v0  ;;  %469 = vmatpush3.msra.mxu0 %v53_v13  ;;  %v428_v17 = vld [vmem:[#allocation5 + $0xa1] ss:$0 sm:$0xff]  ;;  %v57_v21 = vld [vmem:[#allocation5 + $0x98] sm:$0xff]  ;;  %v56_v22 = vld [vmem:[#allocation5 + $0x90] sm:$0xff]  ;;  %v323_v58 = vsub.s32 0, %v322_v55  ;;  %s535_s21 = scalar_lea.vmem %s417_s1, 128  ;;  %p540_p11 = scmp.lt.s32.totalorder %s417_s1, %s417_s1 }
  0x1f   :  { %453 = vmatpush3.msra.mxu1 %v38_v2  ;;  %470 = vmatprep.subr.mxu0 %v565_v0  ;;  %v55_v23 = vld [vmem:[#allocation5 + $0x88] sm:$0xff]  ;;  %v54_v24 = vld [vmem:[#allocation5 + $0x80] sm:$0xff]  ;;  %v44_v25 = vld [vmem:[#allocation5 + $0x30] sm:$0xff]  ;;  %p536_p10 = scmp.ne.s32.totalorder %s417_s1, %s535_s21  ;;  %p541_p12 = scmp.lt.s32.totalorder %s535_s21, %s535_s21 }
  0x20   :  { %455 = vmatmul.mubr.msk.f32.vlgmr.msra.gmra.mxu1 %vm68_vm1, %v63_v3  ;;  %457 = vmatprep.subr.mxu1 %v565_v0  ;;  %v45_v26 = vld [vmem:[#allocation5 + $0x38] sm:$0xff]  ;;  %v221_v27 = vsel %vm147_vm2, %v44_v25, 0.0  ;;  %v46_v29 = vld [vmem:[#allocation5 + $0x40] sm:$0xff]  ;;  %v47_v32 = vld [vmem:[#allocation5 + $0x48] sm:$0xff] }
  0x21   :  { %458 = vmatpush3.msra.mxu1 %v43_v4  ;;  %465 = vmatprep.mubr.msk.f32.mxu1 %vm566_vm0, %v565_v0  ;;  %v222_v28 = vsel %vm147_vm2, %v45_v26, 0.0  ;;  %v224_v31 = vsel %vm147_vm2, %v46_v29, 0.0  ;;  %v226_v34 = vsel %vm147_vm2, %v47_v32, 0.0  ;;  %v48_v35 = vld [vmem:[#allocation5 + $0x50] sm:$0xff]  ;;  %v49_v38 = vld [vmem:[#allocation5 + $0x58] sm:$0xff]  ;;  %v50_v41 = vld [vmem:[#allocation5 + $0x60] sm:$0xff]  ;;  %p542_p13 = por %p541_p12, %p540_p11 }
  0x22   :  { %459 = vmatprep.subr.mxu1 %v565_v0  ;;  %471 = vmatpush3.msra.mxu0 %v52_v14  ;;  %v223_v30 = vadd.f32 %v222_v28, %v221_v27  ;;  %v228_v37 = vsel %vm147_vm2, %v48_v35, 0.0  ;;  %v230_v40 = vsel %vm147_vm2, %v49_v38, 0.0  ;;  %v232_v43 = vsel %vm147_vm2, %v50_v41, 0.0  ;;  %v51_v44 = vld [vmem:[#allocation5 + $0x68] sm:$0xff]  ;;  %v431_v60 = vld [vmem:[#allocation5 + $0xa5] ss:$0 sm:$0xff] }
  0x23   :  { %460 = vmatpush3.msra.mxu1 %v42_v5  ;;  %475 = vmatprep.subr.mxu0 %v565_v0  ;;  %v234_v46 = vsel %vm147_vm2, %v51_v44, 0.0  ;;  %v432_v2 = vld [vmem:[#allocation5 + $0xa6] ss:$0 sm:$0xff]  ;;  %p543_p0 = pnand %p542_p13, %p536_p10 }
  0x24   :  { %461 = vmatprep.subr.mxu1 %v565_v0  ;;  %244 = vperm.xlu0 %494, %v62_v15   ;;  %v225_v33 = vadd.f32 %v224_v31, %v223_v30 }
  0x25   :  { %462 = vmatpush3.msra.mxu1 %v41_v6 }
  0x26   :  { %463 = vmatprep.subr.mxu1 %v565_v0  ;;  %v227_v36 = vadd.f32 %v226_v34, %v225_v33 }
  0x27   :  { %464 = vmatpush3.msra.mxu1 %v40_v7 }
  0x28   :  { %v229_v39 = vadd.f32 %v228_v37, %v227_v36 }
  0x2a   :  { %v231_v42 = vadd.f32 %v230_v40, %v229_v39 }
  0x2c   :  { %v233_v45 = vadd.f32 %v232_v43, %v231_v42 }
  0x2e   :  { %v235_v47 = vadd.f32 %v234_v46, %v233_v45 }
  0x30   :  { %v236_v48 = vrot.slane %v235_v47, 4 }
  0x32   :  { %v237_v49 = vadd.f32 %v236_v48, %v235_v47 }
  0x34   :  { %v238_v50 = vrot.slane %v237_v49, 2 }
  0x36   :  { %v239_v51 = vadd.f32 %v238_v50, %v237_v49 }
  0x38   :  { %v240_v52 = vrot.slane %v239_v51, 1 }
  0x3a   :  { %v241_v54 = vadd.f32 %v240_v52, %v239_v51 }
  0x9f   :  { %v245_v56 = vpop.permute.xlu0 %244 }
  0xa0   :  { %v247_v57 = vmul.f32 %v245_v56, %v241_v54 }
  0xa2   :  { %v324_v59 = vrot.slane %v247_v57, %v323_v58 }
  0xe0   :  { %v138_v9 = vpop.f32.mrf.mxu1 }
  0xe1   :  { %v139_v10 = vadd.f32 %v426_v8, %v138_v9 }
  0xe2   :  { %v456_v11 = vpop.f32.mrf.mxu1 }
  0xe3   :  { %v142_v12 = vmax.f32 %v139_v10, 0.0 }
  0xe5   :  { %466 = vmatmul.mubr.msk.f32.vlgmr.msra.gmra.mxu1 %vm147_vm2, %v142_v12 }
 0x1a5   :  { %v217_v18 = vpop.f32.mrf.mxu1 }
 0x1a6   :  { %v218_v19 = vadd.f32 %v428_v17, %v217_v18 }
 0x1a7   :  { %v467_v20 = vpop.f32.mrf.mxu1 }
 0x1a8   :  { %473 = vmatmul.mubr.msk.f32.vlgmr.msra.gmra.mxu0 %vm68_vm1, %v218_v19 }
 0x1a9   :  { %483 = vmatprep.mubr.msk.f32.mxu0 %vm566_vm0, %v565_v0  ;;  %476 = vmatpush3.msra.mxu0 %v57_v21 }
 0x1aa   :  { %477 = vmatprep.subr.mxu0 %v565_v0 }
 0x1ab   :  { %478 = vmatpush3.msra.mxu0 %v56_v22 }
 0x1ac   :  { %479 = vmatprep.subr.mxu0 %v565_v0 }
 0x1ad   :  { %480 = vmatpush3.msra.mxu0 %v55_v23 }
 0x1ae   :  { %481 = vmatprep.subr.mxu0 %v565_v0 }
 0x1af   :  { %482 = vmatpush3.msra.mxu0 %v54_v24 }
 0x268   :  { %v317_v61 = vpop.f32.mrf.mxu0 }
 0x269   :  { %v325_v62 = vadd.f32 %v324_v59, %v317_v61 }
 0x26a   :  { %v474_v63 = vpop.f32.mrf.mxu0 }
 0x26b   :  { %v330_v0 = vadd.f32 %v431_v60, %v325_v62 }
 0x26d   :  { %v331_v1 = vmax.f32 %v330_v0, 0.0 }
 0x26f   :  { %484 = vmatmul.mubr.msk.f32.vlgmr.msra.gmra.mxu0 %vm147_vm2, %v331_v1 }
 0x32f   :  { %v405_v3 = vpop.f32.mrf.mxu0 }
 0x330   :  { %v406_v4 = vadd.f32 %v432_v2, %v405_v3 }
 0x331   :  { %v485_v5 = vpop.f32.mrf.mxu0 }
 0x332   :  { %409 = vst [vmem:[#allocation7] sm:$0xff] %v406_v4 }
 0x333   :  { %546 = shalt.err (!%p543_p0)
}
 0x334   :  { %419 = dma.vmem_to_hbm [thread:$0]  %s417_s1, 128, %s611_s2, [#allocation4]  }
 0x335   :  { %559 = dma.done.wait [#allocation4], 128  }
 0x336   :  { %560 = vsyncadd [#allocation4], 4294967168 }
 0x337   :  { %423 = vsyncpa [#allocation3], 1 }
 0x338   :  { %424 = vsyncpa [#allocation6], 1 }
 0x339   :  { %425 = vsyncpa [#allocation4], 1 }

</bundles_post_ra>
